<compile_context>
chip_gen: v7x
topology: tpu7x:2x2x1
jax: 0.10.0
libtpu: 0.0.40
codegen_flags: <defaults>
</compile_context>

<pallas_src>
import functools

import jax
import jax.numpy as jnp
from jax.experimental import pallas as pl
from jax.experimental.pallas import tpu as pltpu

LANE = 128      # vreg lane width: padded feature dims are multiples of this
SUBLANE = 8     # vreg sublane count: batch tile is a multiple of this


# ----------------------------- Pallas kernel ------------------------------- #

def fused_dp_kernel(x_ref, ew_ref, eb_ref, w1_ref, b1_ref, w2_ref, b2_ref, o_ref):
    """encoder stand-in (linear+tanh) + proj_head MLP, fully fused.

    x / weights are bf16 (storage), biases f32. Every dot accumulates in f32 on
    the MXU; tanh/relu/bias math stays f32; bf16 casts only feed the next
    matmul and the final store. Dropout is identity in eval; batch_norm=False.
    """
    x = x_ref[...]                                                   # bf16 [TB, D]
    # encoder stand-in: linear + tanh                                -> h  [TB, E_pad] f32
    h = jnp.tanh(
        jnp.dot(x, ew_ref[...], preferred_element_type=jnp.float32) + eb_ref[...])
    # proj_head layer 1: Linear -> ReLU                              -> a1 [TB, H_pad] f32
    a1 = jnp.maximum(
        jnp.dot(h.astype(jnp.bfloat16), w1_ref[...],
                preferred_element_type=jnp.float32) + b1_ref[...],
        0.0)
    # proj_head layer 2: Linear                                      -> z2 [TB, O_pad] f32
    z2 = jnp.dot(a1.astype(jnp.bfloat16), w2_ref[...],
                 preferred_element_type=jnp.float32) + b2_ref[...]
    o_ref[...] = z2.astype(o_ref.dtype)                              # bf16 lane-dense store


# ------------------------------ Helpers ------------------------------------ #

def _round_up(n, m):
    return ((n + m - 1) // m) * m


def _pad2d(a, rows, cols):
    r, c = a.shape
    return jnp.pad(a, ((0, rows - r), (0, cols - c)))


def _vmem_limit_bytes(tb, d, e_pad, h_pad, o_pad):
    """Rough VMEM budget: weights (x2 buffers), double-buffered x/out tiles,
    and ~4 f32 intermediate slabs worth of spill scratch."""
    w_bytes = 2 * (d * e_pad + e_pad * h_pad + h_pad * o_pad) * 2          # bf16 weights, 2 bufs
    b_bytes = 2 * (e_pad + h_pad + o_pad) * 4                              # f32 biases, 2 bufs
    io_bytes = 2 * tb * (d + o_pad) * 2                                    # bf16 x/out tiles, 2 bufs
    spill = 4 * tb * max(e_pad, h_pad, o_pad) * 4                          # f32 intermediates
    need = int(1.25 * (w_bytes + b_bytes + io_bytes + spill)) + (1 << 20)
    return max(32 << 20, min(need, 64 << 20))


# --------------------------- Parameter prep -------------------------------- #

def prepare_params(params):
    """Pad feature dims to 128 lanes + cast weights to bf16 ONCE (not per call).

    Zero-padded weight cols/rows and zero-padded biases keep padded lanes
    exactly 0 through tanh(0)=0 and relu, so no leakage into real outputs.
    """
    drug_dim, enc_dim = params["enc_w"].shape
    hid_dim = params["w1"].shape[1]
    out_dim = params["w2"].shape[1]
    e_pad = _round_up(enc_dim, LANE)
    h_pad = _round_up(hid_dim, LANE)
    o_pad = _round_up(out_dim, LANE)
    return {
        "enc_w": _pad2d(params["enc_w"], drug_dim, e_pad).astype(jnp.bfloat16),
        "enc_b": _pad2d(params["enc_b"], 1, e_pad).astype(jnp.float32),
        "w1": _pad2d(params["w1"], e_pad, h_pad).astype(jnp.bfloat16),
        "b1": _pad2d(params["b1"], 1, h_pad).astype(jnp.float32),
        "w2": _pad2d(params["w2"], h_pad, o_pad).astype(jnp.bfloat16),
        "b2": _pad2d(params["b2"], 1, o_pad).astype(jnp.float32),
    }


# ------------------------------ Wrapper ------------------------------------ #

@functools.partial(jax.jit, static_argnames=("out_dim", "block_b"))
def dp_model_forward(drug, prepped, *, out_dim, block_b=1024):
    """DPModel.forward: drug [B, drug_dim] -> logits [B, out_dim] (bf16)."""
    B, drug_dim = drug.shape
    e_pad = prepped["enc_w"].shape[1]
    h_pad = prepped["w1"].shape[1]
    o_pad = prepped["w2"].shape[1]

    # bf16 activation storage (no-op if the caller already stores x in bf16).
    x = drug if drug.dtype == jnp.bfloat16 else drug.astype(jnp.bfloat16)

    # Batch tile: aim for >=2 grid steps (so the "parallel" axis feeds both
    # v7x TensorCores) without rounding B up to a multiple of the tile.
    # The last grid step may be ragged; rows are independent and Pallas masks
    # the out-of-bounds rows of the boundary block.
    n_steps = max(2, pl.cdiv(B, block_b))
    tb = min(_round_up(pl.cdiv(B, n_steps), SUBLANE), _round_up(B, SUBLANE))
    grid = (pl.cdiv(B, tb),)

    def row_spec(shape):       # streamed over the batch grid axis
        return pl.BlockSpec(shape, lambda i: (i, 0))

    def resident_spec(shape):  # grid-invariant -> stays in VMEM across steps
        return pl.BlockSpec(shape, lambda i: (0, 0))

    out_p = pl.pallas_call(
        fused_dp_kernel,
        out_shape=jax.ShapeDtypeStruct((B, o_pad), jnp.bfloat16),
        grid=grid,
        in_specs=[
            # x block's last dim == full array extent -> exempt from the 128
            # rule; avoids an XLA pad copy of the whole input each call.
            row_spec((tb, drug_dim)),
            resident_spec((drug_dim, e_pad)),    # encoder stand-in weight (bf16)
            resident_spec((1, e_pad)),           # encoder stand-in bias   (f32)
            resident_spec((e_pad, h_pad)),       # proj_head W1            (bf16)
            resident_spec((1, h_pad)),           # proj_head b1            (f32)
            resident_spec((h_pad, o_pad)),       # proj_head W2            (bf16)
            resident_spec((1, o_pad)),           # proj_head b2            (f32)
        ],
        out_specs=row_spec((tb, o_pad)),
        compiler_params=pltpu.CompilerParams(
            dimension_semantics=("parallel",),   # megacore-shard the batch axis
            vmem_limit_bytes=_vmem_limit_bytes(tb, drug_dim, e_pad, h_pad, o_pad),
        ),
    )(x, prepped["enc_w"], prepped["enc_b"], prepped["w1"], prepped["b1"],
      prepped["w2"], prepped["b2"])

    # Slice padded output lanes off to preserve the module's [B, out_dim]
    # contract (the padded slab could be returned directly if the consumer
    # tolerates it).
    return out_p[:, :out_dim]


# --------------------------- Parameter init -------------------------------- #

def init_params(key, drug_dim, enc_dim, hidden_dim, out_dim):
    ks = jax.random.split(key, 6)
    scale = 0.1
    return {
        # encoder stand-in
        "enc_w": scale * jax.random.normal(ks[0], (drug_dim, enc_dim), jnp.float32),
        "enc_b": scale * jax.random.normal(ks[1], (1, enc_dim), jnp.float32),
        # proj_head MLP: enc_dim -> hidden -> out_dim
        "w1": scale * jax.random.normal(ks[2], (enc_dim, hidden_dim), jnp.float32),
        "b1": scale * jax.random.normal(ks[3], (1, hidden_dim), jnp.float32),
        "w2": scale * jax.random.normal(ks[4], (hidden_dim, out_dim), jnp.float32),
        "b2": scale * jax.random.normal(ks[5], (1, out_dim), jnp.float32),
    }


# ------------------------------ Reference ---------------------------------- #

def dp_model_reference(drug_bf16, p):
    """Pure-JAX reference mirroring the kernel's bf16-storage / f32-math scheme."""
    f32, bf16 = jnp.float32, jnp.bfloat16
    q = lambda a: a.astype(bf16).astype(f32)       # bf16 storage quantization
    x = drug_bf16.astype(f32)
    h = jnp.tanh(x @ q(p["enc_w"]) + p["enc_b"])
    a1 = jnp.maximum(q(h) @ q(p["w1"]) + p["b1"], 0.0)
    z2 = q(a1) @ q(p["w2"]) + p["b2"]
    return z2.astype(bf16).astype(f32)


# -------------------------------- Main -------------------------------------- #

if __name__ == "__main__":
    key = jax.random.PRNGKey(0)
    k_in, k_par = jax.random.split(key)

    B, DRUG_DIM, ENC_DIM, HIDDEN, OUT_DIM = 8, 32, 32, 64, 16

    drug = jax.random.normal(k_in, (B, DRUG_DIM), jnp.float32)
    params = init_params(k_par, DRUG_DIM, ENC_DIM, HIDDEN, OUT_DIM)

    prepped = prepare_params(params)               # one-time pad + bf16 cast
    drug_bf16 = drug.astype(jnp.bfloat16)          # bf16 activation storage

    out = dp_model_forward(drug_bf16, prepped, out_dim=OUT_DIM)
    out = jax.block_until_ready(out)

    ref = dp_model_reference(drug_bf16, params)
    assert out.shape == (B, OUT_DIM)
    assert out.dtype == jnp.bfloat16
    assert jnp.allclose(out.astype(jnp.float32), ref, atol=1e-2, rtol=1e-2), \
        "mismatch vs reference"

    print("KERNEL_OK")
</pallas_src>

<mosaic_0001>
module attributes {stable_mosaic.version = 11 : i64} {
  func.func @fused_dp_kernel(%arg0: i32, %arg1: memref<8x32xbf16, #tpu.memory_space<vmem>>, %arg2: memref<32x128xbf16, #tpu.memory_space<vmem>>, %arg3: memref<1x128xf32, #tpu.memory_space<vmem>>, %arg4: memref<128x128xbf16, #tpu.memory_space<vmem>>, %arg5: memref<1x128xf32, #tpu.memory_space<vmem>>, %arg6: memref<128x128xbf16, #tpu.memory_space<vmem>>, %arg7: memref<1x128xf32, #tpu.memory_space<vmem>>, %arg8: memref<8x128xbf16, #tpu.memory_space<vmem>>) attributes {dimension_semantics = [#tpu.dimension_semantics<parallel>], iteration_bounds = array<i64: 1>, scalar_prefetch = 0 : i64, scratch_operands = 0 : i64, tpu.core_type = #tpu.core_type<tc>, window_params = [{transform_indices = @transform_0, window_bounds = array<i64: 8, 32>}, {pipeline_mode = #tpu.pipeline_mode<synchronous>, transform_indices = @transform_1, window_bounds = array<i64: 32, 128>}, {pipeline_mode = #tpu.pipeline_mode<synchronous>, transform_indices = @transform_2, window_bounds = array<i64: 1, 128>}, {pipeline_mode = #tpu.pipeline_mode<synchronous>, transform_indices = @transform_3, window_bounds = array<i64: 128, 128>}, {pipeline_mode = #tpu.pipeline_mode<synchronous>, transform_indices = @transform_4, window_bounds = array<i64: 1, 128>}, {pipeline_mode = #tpu.pipeline_mode<synchronous>, transform_indices = @transform_5, window_bounds = array<i64: 128, 128>}, {pipeline_mode = #tpu.pipeline_mode<synchronous>, transform_indices = @transform_6, window_bounds = array<i64: 1, 128>}, {transform_indices = @transform_7, window_bounds = array<i64: 8, 128>}]} {
    %c0 = arith.constant 0 : index
    %c0_0 = arith.constant 0 : index
    %0 = vector.load %arg1[%c0, %c0_0] : memref<8x32xbf16, #tpu.memory_space<vmem>>, vector<8x32xbf16>
    %c0_1 = arith.constant 0 : index
    %c0_2 = arith.constant 0 : index
    %1 = vector.load %arg2[%c0_1, %c0_2] : memref<32x128xbf16, #tpu.memory_space<vmem>>, vector<32x128xbf16>
    %cst = arith.constant dense<0.000000e+00> : vector<8x128xf32>
    %2 = tpu.matmul %0, %1, %cst {dimension_numbers = #tpu.dot_dimension_numbers<[1], [0], [0], [1], [0, 0, 1, 1], [], []>} : vector<8x32xbf16>, vector<32x128xbf16>, vector<8x128xf32> -> vector<8x128xf32>
    %c0_3 = arith.constant 0 : index
    %c0_4 = arith.constant 0 : index
    %3 = vector.load %arg3[%c0_3, %c0_4] : memref<1x128xf32, #tpu.memory_space<vmem>>, vector<1x128xf32>
    %4 = vector.broadcast %3 : vector<1x128xf32> to vector<8x128xf32>
    %5 = arith.addf %2, %4 : vector<8x128xf32>
    %6 = math.tanh %5 : vector<8x128xf32>
    %7 = arith.truncf %6 : vector<8x128xf32> to vector<8x128xbf16>
    %c0_5 = arith.constant 0 : index
    %c0_6 = arith.constant 0 : index
    %8 = vector.load %arg4[%c0_5, %c0_6] : memref<128x128xbf16, #tpu.memory_space<vmem>>, vector<128x128xbf16>
    %cst_7 = arith.constant dense<0.000000e+00> : vector<8x128xf32>
    %9 = tpu.matmul %7, %8, %cst_7 {dimension_numbers = #tpu.dot_dimension_numbers<[1], [0], [0], [1], [0, 0, 1, 1], [], []>} : vector<8x128xbf16>, vector<128x128xbf16>, vector<8x128xf32> -> vector<8x128xf32>
    %c0_8 = arith.constant 0 : index
    %c0_9 = arith.constant 0 : index
    %10 = vector.load %arg5[%c0_8, %c0_9] : memref<1x128xf32, #tpu.memory_space<vmem>>, vector<1x128xf32>
    %11 = vector.broadcast %10 : vector<1x128xf32> to vector<8x128xf32>
    %12 = arith.addf %9, %11 : vector<8x128xf32>
    %cst_10 = arith.constant 0.000000e+00 : f32
    %13 = vector.broadcast %cst_10 : f32 to vector<8x128xf32>
    %14 = arith.maximumf %12, %13 : vector<8x128xf32>
    %15 = arith.truncf %14 : vector<8x128xf32> to vector<8x128xbf16>
    %c0_11 = arith.constant 0 : index
    %c0_12 = arith.constant 0 : index
    %16 = vector.load %arg6[%c0_11, %c0_12] : memref<128x128xbf16, #tpu.memory_space<vmem>>, vector<128x128xbf16>
    %cst_13 = arith.constant dense<0.000000e+00> : vector<8x128xf32>
    %17 = tpu.matmul %15, %16, %cst_13 {dimension_numbers = #tpu.dot_dimension_numbers<[1], [0], [0], [1], [0, 0, 1, 1], [], []>} : vector<8x128xbf16>, vector<128x128xbf16>, vector<8x128xf32> -> vector<8x128xf32>
    %c0_14 = arith.constant 0 : index
    %c0_15 = arith.constant 0 : index
    %18 = vector.load %arg7[%c0_14, %c0_15] : memref<1x128xf32, #tpu.memory_space<vmem>>, vector<1x128xf32>
    %19 = vector.broadcast %18 : vector<1x128xf32> to vector<8x128xf32>
    %20 = arith.addf %17, %19 : vector<8x128xf32>
    %21 = arith.truncf %20 : vector<8x128xf32> to vector<8x128xbf16>
    %c0_16 = arith.constant 0 : index
    %c0_17 = arith.constant 0 : index
    %22 = vector.load %arg8[%c0_16, %c0_17] : memref<8x128xbf16, #tpu.memory_space<vmem>>, vector<8x128xbf16>
    tpu.vector_store %arg8[%c0_16, %c0_17], %21 {strides = array<i32>} : memref<8x128xbf16, #tpu.memory_space<vmem>>, vector<8x128xbf16>,
    return
  }
  func.func @transform_0(%arg0: i32) -> (i32, i32) {
    %c0_i32 = arith.constant 0 : i32
    %c0_i32_0 = arith.constant 0 : i32
    return %arg0, %c0_i32 : i32, i32
  }
  func.func @transform_1(%arg0: i32) -> (i32, i32) {
    %c0_i32 = arith.constant 0 : i32
    %c0_i32_0 = arith.constant 0 : i32
    %c0_i32_1 = arith.constant 0 : i32
    return %c0_i32, %c0_i32_0 : i32, i32
  }
  func.func @transform_2(%arg0: i32) -> (i32, i32) {
    %c0_i32 = arith.constant 0 : i32
    %c0_i32_0 = arith.constant 0 : i32
    %c0_i32_1 = arith.constant 0 : i32
    return %c0_i32, %c0_i32_0 : i32, i32
  }
  func.func @transform_3(%arg0: i32) -> (i32, i32) {
    %c0_i32 = arith.constant 0 : i32
    %c0_i32_0 = arith.constant 0 : i32
    %c0_i32_1 = arith.constant 0 : i32
    return %c0_i32, %c0_i32_0 : i32, i32
  }
  func.func @transform_4(%arg0: i32) -> (i32, i32) {
    %c0_i32 = arith.constant 0 : i32
    %c0_i32_0 = arith.constant 0 : i32
    %c0_i32_1 = arith.constant 0 : i32
    return %c0_i32, %c0_i32_0 : i32, i32
  }
  func.func @transform_5(%arg0: i32) -> (i32, i32) {
    %c0_i32 = arith.constant 0 : i32
    %c0_i32_0 = arith.constant 0 : i32
    %c0_i32_1 = arith.constant 0 : i32
    return %c0_i32, %c0_i32_0 : i32, i32
  }
  func.func @transform_6(%arg0: i32) -> (i32, i32) {
    %c0_i32 = arith.constant 0 : i32
    %c0_i32_0 = arith.constant 0 : i32
    %c0_i32_1 = arith.constant 0 : i32
    return %c0_i32, %c0_i32_0 : i32, i32
  }
  func.func @transform_7(%arg0: i32) -> (i32, i32) {
    %c0_i32 = arith.constant 0 : i32
    %c0_i32_0 = arith.constant 0 : i32
    return %arg0, %c0_i32 : i32, i32
  }
}

</mosaic_0001>

<bundles_post_ra>
// kernel: dp_model_forward.1
= control target key start
LH: loop header
LB: loop body
LE: loop exit
PB: predicated region body
PF: predicated region fallthrough
CT: control target
= control target key end

     0   :  { %12 = vsyncpa [#allocation3], 0  ;;  %s783_s0 = inlined_call_operand.hbm [shape: bf16[8,32], index: 0, kind: input, shape index: {}]   ;;  %s784_s1 = inlined_call_operand.hbm [shape: bf16[32,128], index: 1, kind: input, shape index: {}]   ;;  %s785_s2 = inlined_call_operand.vmem [shape: f32[1,128], index: 2, kind: input, shape index: {}]   ;;  %s786_s3 = inlined_call_operand.hbm [shape: bf16[128,128], index: 3, kind: input, shape index: {}]   ;;  %s787_s4 = inlined_call_operand.vmem [shape: f32[1,128], index: 4, kind: input, shape index: {}]   ;;  %s788_s5 = inlined_call_operand.hbm [shape: bf16[128,128], index: 5, kind: input, shape index: {}]   ;;  %s789_s6 = inlined_call_operand.vmem [shape: f32[1,128], index: 6, kind: input, shape index: {}]   ;;  %s790_s7 = inlined_call_operand.hbm [shape: bf16[8,128], index: 7, kind: output, shape index: {}]  }
   0x1   :  { %13 = vsyncpa [#allocation6], 0 }
   0x2   :  { %14 = vsyncpa [#allocation9], 0 }
   0x3   :  { %15 = vsyncpa [#allocation4], 0  ;;  %s632_s24 = smov [#allocation5]   ;;  %s514_s28 = scalar_lea.hbm %s784_s1, 256 }
   0x4   :  { %s31_s25 = sshll.u32 %s632_s24, 4  ;;  %p515_p0 = scmp.ne.s32.totalorder %s784_s1, %s514_s28  ;;  %s32_s25 = int_to_ptr.vmem [resolvable:$true] %s31_s25 }
   0x5   :  { %p518_p1 = scmp.lt.u32.totalorder %s514_s28, %s784_s1 }
   0x7   :  { %p520_p2 = pnand %p518_p1, %p515_p0 }
   0x9   :  { %523 = shalt.err (!%p520_p2)
}
   0xa   :  { %s524_s10 = scalar_lea.vmem %s32_s25, 256  ;;  %p529_p4 = scmp.lt.s32.totalorder %s32_s25, %s32_s25 }
   0xb   :  { %p525_p3 = scmp.ne.s32.totalorder %s32_s25, %s524_s10  ;;  %p530_p5 = scmp.lt.s32.totalorder %s524_s10, %s524_s10 }
   0xd   :  { %p531_p6 = por %p530_p5, %p529_p4 }
   0xf   :  { %p532_p7 = pnand %p531_p6, %p525_p3 }
  0x11   :  { %535 = shalt.err (!%p532_p7)
}
  0x12   :  { %s633_s11 = smov 64   ;;  %s634_s12 = smov 4  }
  0x13   :  { %37 = dma.hbm_to_vmem [thread:$0]  %s784_s1, 256, %s32_s25, [#allocation6], %s633_s11, %s633_s11, %s634_s12  }
  0x14   :  { %s635_s15 = smov [#allocation2]   ;;  %s636_s17 = smov [#allocation7]  }
  0x15   :  { %s22_s16 = sshll.u32 %s635_s15, 4  ;;  %s45_s18 = sshll.u32 %s636_s17, 4  ;;  %s23_s16 = int_to_ptr.vmem [resolvable:$true] %s22_s16  ;;  %s46_s18 = int_to_ptr.vmem [resolvable:$true] %s45_s18 }
  0x16   :  { %s536_s21 = scalar_lea.hbm %s783_s0, 64 }
  0x17   :  { %p537_p8 = scmp.ne.s32.totalorder %s783_s0, %s536_s21  ;;  %p540_p9 = scmp.lt.u32.totalorder %s536_s21, %s783_s0 }
  0x19   :  { %p542_p10 = pnand %p540_p9, %p537_p8 }
  0x1b   :  { %545 = shalt.err (!%p542_p10)
}
  0x1c   :  { %s546_s1 = scalar_lea.vmem %s23_s16, 64  ;;  %p551_p12 = scmp.lt.s32.totalorder %s23_s16, %s23_s16 }
  0x1d   :  { %p547_p11 = scmp.ne.s32.totalorder %s23_s16, %s546_s1  ;;  %p552_p13 = scmp.lt.s32.totalorder %s546_s1, %s546_s1 }
  0x1f   :  { %p553_p0 = por %p552_p13, %p551_p12 }
  0x21   :  { %p554_p1 = pnand %p553_p0, %p547_p11 }
  0x23   :  { %557 = shalt.err (!%p554_p1)
}
  0x24   :  { %25 = dma.hbm_to_vmem [thread:$0]  %s783_s0, 64, %s23_s16, [#allocation3]  }
  0x25   :  { %s558_s30 = scalar_lea.hbm %s786_s3, 1024 }
  0x26   :  { %p559_p2 = scmp.ne.s32.totalorder %s786_s3, %s558_s30  ;;  %p562_p3 = scmp.lt.u32.totalorder %s558_s30, %s786_s3 }
  0x28   :  { %p564_p4 = pnand %p562_p3, %p559_p2 }
  0x2a   :  { %567 = shalt.err (!%p564_p4)
}
  0x2b   :  { %s568_s14 = scalar_lea.vmem %s46_s18, 1024  ;;  %p573_p6 = scmp.lt.s32.totalorder %s46_s18, %s46_s18 }
  0x2c   :  { %p569_p5 = scmp.ne.s32.totalorder %s46_s18, %s568_s14  ;;  %p574_p7 = scmp.lt.s32.totalorder %s568_s14, %s568_s14 }
  0x2e   :  { %p575_p8 = por %p574_p7, %p573_p6 }
  0x30   :  { %p576_p9 = pnand %p575_p8, %p569_p5 }
  0x32   :  { %579 = shalt.err (!%p576_p9)
}
  0x33   :  { %51 = dma.hbm_to_vmem [thread:$0]  %s786_s3, 1024, %s46_s18, [#allocation6], %s633_s11, %s633_s11, %s634_s12  }
  0x34   :  { %s637_s16 = smov [#allocation8]   ;;  %s580_s21 = scalar_lea.hbm %s788_s5, 1024 }
  0x35   :  { %s59_s17 = sshll.u32 %s637_s16, 4  ;;  %p581_p10 = scmp.ne.s32.totalorder %s788_s5, %s580_s21  ;;  %s60_s17 = int_to_ptr.vmem [resolvable:$true] %s59_s17 }
  0x36   :  { %p584_p11 = scmp.lt.u32.totalorder %s580_s21, %s788_s5 }
  0x38   :  { %p586_p12 = pnand %p584_p11, %p581_p10 }
  0x3a   :  { %589 = shalt.err (!%p586_p12)
}
  0x3b   :  { %s590_s1 = scalar_lea.vmem %s60_s17, 1024  ;;  %p595_p0 = scmp.lt.s32.totalorder %s60_s17, %s60_s17 }
  0x3c   :  { %p591_p13 = scmp.ne.s32.totalorder %s60_s17, %s590_s1  ;;  %p596_p1 = scmp.lt.s32.totalorder %s590_s1, %s590_s1 }
  0x3e   :  { %p597_p2 = por %p596_p1, %p595_p0 }
  0x40   :  { %p598_p3 = pnand %p597_p2, %p591_p13 }
  0x42   :  { %601 = shalt.err (!%p598_p3)
}
  0x43   :  { %65 = dma.hbm_to_vmem [thread:$0]  %s788_s5, 1024, %s60_s17, [#allocation9], %s633_s11, %s633_s11, %s634_s12  }
  0x44   :  { %624 = dma.done.wait [#allocation3], 64  }
  0x45   :  { %625 = vsyncadd [#allocation3], 4294967232 }
  0x46   :  { %626 = dma.done.wait [#allocation6], 1280  }
  0x47   :  { %627 = vsyncadd [#allocation6], 4294966016 }
  0x48   :  { %628 = dma.done.wait [#allocation9], 1024  }
  0x49   :  { %629 = vsyncadd [#allocation9], 4294966272  ;;  %v638_v0 = vmov 0.0   ;;  %vm639_vm0 = vmmov 0   ;;  %v494_v1 = vld [vmem:[#allocation5] sm:$0xff]   ;;  %v495_v2 = vld [vmem:[#allocation5 + $0x8] sm:$0xff]  }
  0x4a   :  { %437 = vmatprep.subr.bf16.mxu0 %v638_v0  ;;  %441 = vmatprep.mubr.msk.bf16.mxu0 %vm639_vm0, %v638_v0  ;;  %v496_v3 = vld [vmem:[#allocation7] sm:$0xff]   ;;  %v497_v4 = vld [vmem:[#allocation7 + $0x8] sm:$0xff]   ;;  %vm105_vm1 = vcmask 261120   ;;  %v498_v6 = vld [vmem:[#allocation7 + $0x10] sm:$0xff]   ;;  %s640_s28 = smov [#allocation10]  }
  0x4b   :  { %445 = vmatprep.subr.bf16.mxu1 %v638_v0  ;;  %461 = vmatprep.mubr.msk.bf16.mxu1 %vm639_vm0, %v638_v0  ;;  %v81_v5 = vld [vmem:[#allocation2] sm:$0xf]  ;;  %v499_v7 = vld [vmem:[#allocation7 + $0x18] sm:$0xff]   ;;  %v500_v8 = vld [vmem:[#allocation7 + $0x20] sm:$0xff]   ;;  %s383_s29 = sshll.u32 %s640_s28, 4  ;;  %s384_s29 = int_to_ptr.vmem [resolvable:$true] %s383_s29 }
  0x4c   :  { %438 = vmatpush3.bf16.msra.mxu0 %v494_v1  ;;  %446 = vmatpush3.bf16.msra.mxu1 %v496_v3  ;;  %v501_v9 = vld [vmem:[#allocation7 + $0x28] sm:$0xff]   ;;  %v502_v10 = vld [vmem:[#allocation7 + $0x30] sm:$0xff]   ;;  %v503_v11 = vld [vmem:[#allocation7 + $0x38] sm:$0xff]   ;;  %p607_p5 = scmp.lt.s32.totalorder %s384_s29, %s384_s29 }
  0x4d   :  { %439 = vmatprep.subr.bf16.mxu0 %v638_v0  ;;  %447 = vmatprep.subr.bf16.mxu1 %v638_v0  ;;  %v504_v12 = vld [vmem:[#allocation8] sm:$0xff]   ;;  %v505_v13 = vld [vmem:[#allocation8 + $0x8] sm:$0xff]   ;;  %v506_v14 = vld [vmem:[#allocation8 + $0x10] sm:$0xff]  }
  0x4e   :  { %v507_v15 = vld [vmem:[#allocation8 + $0x18] sm:$0xff]   ;;  %v508_v16 = vld [vmem:[#allocation8 + $0x20] sm:$0xff]   ;;  %v509_v17 = vld [vmem:[#allocation8 + $0x28] sm:$0xff]  }
  0x4f   :  { %v394_v18 = vld [vmem:[%s785_s2] ss:$0 sm:$0xff]  ;;  %v510_v26 = vld [vmem:[#allocation8 + $0x30] sm:$0xff]   ;;  %v511_v27 = vld [vmem:[#allocation8 + $0x38] sm:$0xff]  }
  0x50   :  { %440 = vmatpush3.bf16.msra.mxu0 %v495_v2  ;;  %448 = vmatpush3.bf16.msra.mxu1 %v497_v4  ;;  %v398_v28 = vld [vmem:[%s787_s4] ss:$0 sm:$0xff]  ;;  %s602_s4 = scalar_lea.vmem %s384_s29, 64 }
  0x51   :  { %465 = vmatprep.subr.bf16.mxu0 %v638_v0  ;;  %449 = vmatprep.subr.bf16.mxu1 %v638_v0  ;;  %v407_v36 = vld [vmem:[%s789_s6] ss:$0 sm:$0xff]  ;;  %p603_p4 = scmp.ne.s32.totalorder %s384_s29, %s602_s4  ;;  %p608_p6 = scmp.lt.s32.totalorder %s602_s4, %s602_s4 }
  0x53   :  { %442 = vmatmul.mubr.msk.bf16.vlgmr.msra.gmra.mrb[0].mxu0 %vm105_vm1, %v81_v5  ;;  %p609_p7 = por %p608_p6, %p607_p5 }
  0x54   :  { %481 = vmatprep.mubr.msk.bf16.mxu0 %vm639_vm0, %v638_v0  ;;  %450 = vmatpush3.bf16.msra.mxu1 %v498_v6 }
  0x55   :  { %451 = vmatprep.subr.bf16.mxu1 %v638_v0  ;;  %466 = vmatpush3.bf16.msra.mxu0 %v504_v12  ;;  %p610_p8 = pnand %p609_p7, %p603_p4 }
  0x56   :  { %467 = vmatprep.subr.bf16.mxu0 %v638_v0 }
  0x58   :  { %452 = vmatpush3.bf16.msra.mxu1 %v499_v7 }
  0x59   :  { %453 = vmatprep.subr.bf16.mxu1 %v638_v0  ;;  %468 = vmatpush3.bf16.msra.mxu0 %v505_v13 }
  0x5a   :  { %469 = vmatprep.subr.bf16.mxu0 %v638_v0 }
  0x5c   :  { %454 = vmatpush3.bf16.msra.mxu1 %v500_v8 }
  0x5d   :  { %455 = vmatprep.subr.bf16.mxu1 %v638_v0  ;;  %470 = vmatpush3.bf16.msra.mxu0 %v506_v14 }
  0x5e   :  { %471 = vmatprep.subr.bf16.mxu0 %v638_v0 }
  0x60   :  { %456 = vmatpush3.bf16.msra.mxu1 %v501_v9 }
  0x61   :  { %457 = vmatprep.subr.bf16.mxu1 %v638_v0  ;;  %472 = vmatpush3.bf16.msra.mxu0 %v507_v15 }
  0x62   :  { %473 = vmatprep.subr.bf16.mxu0 %v638_v0 }
  0x64   :  { %458 = vmatpush3.bf16.msra.mxu1 %v502_v10 }
  0x65   :  { %459 = vmatprep.subr.bf16.mxu1 %v638_v0  ;;  %474 = vmatpush3.bf16.msra.mxu0 %v508_v16 }
  0x66   :  { %475 = vmatprep.subr.bf16.mxu0 %v638_v0 }
  0x68   :  { %460 = vmatpush3.bf16.msra.mxu1 %v503_v11 }
  0x69   :  { %476 = vmatpush3.bf16.msra.mxu0 %v509_v17 }
  0x6a   :  { %477 = vmatprep.subr.bf16.mxu0 %v638_v0 }
  0x6d   :  { %478 = vmatpush3.bf16.msra.mxu0 %v510_v26 }
  0x6e   :  { %479 = vmatprep.subr.bf16.mxu0 %v638_v0 }
  0x71   :  { %480 = vmatpush3.bf16.msra.mxu0 %v511_v27 }
 0x126   :  { %v143_v19 = vpop.f32.mrb[0].mxu0 }
 0x127   :  { %v144_v20 = vadd.f32 %v394_v18, %v143_v19  ;;  %v443_v21 = vpop.f32.mrb[1].mxu0 }
 0x128   :  { %v146_v22 = vpop.f32.mrb[2].mxu0 }
 0x129   :  { %512 = vtanh.f32 %v144_v20  ;;  %v444_v23 = vpop.f32.mrb[3].mxu0 }
 0x133   :  { %v513_v24 = vpop.eup %512 }
 0x134   :  { %v150_v25 = vpack.c.bf16 %v513_v24, %v513_v24 }
 0x136   :  { %462 = vmatmul.mubr.bf16.vlgmr.msra.gmra.mrb[0].mxu1 %v150_v25 }
 0x209   :  { %v256_v29 = vpop.f32.mrb[0].mxu1 }
 0x20a   :  { %v257_v30 = vadd.f32 %v398_v28, %v256_v29  ;;  %v463_v31 = vpop.f32.mrb[1].mxu1 }
 0x20b   :  { %v259_v32 = vpop.f32.mrb[2].mxu1 }
 0x20c   :  { %v262_v33 = vmax.f32 %v257_v30, 0.0  ;;  %v464_v34 = vpop.f32.mrb[3].mxu1 }
 0x20e   :  { %v263_v35 = vpack.c.bf16 %v262_v33, %v262_v33 }
 0x210   :  { %482 = vmatmul.mubr.bf16.vlgmr.msra.gmra.mrb[4].mxu0 %v263_v35 }
 0x2e3   :  { %v369_v37 = vpop.f32.mrb[4].mxu0 }
 0x2e4   :  { %v370_v38 = vadd.f32 %v407_v36, %v369_v37  ;;  %v483_v39 = vpop.f32.mrb[5].mxu0 }
 0x2e5   :  { %v372_v40 = vpop.f32.mrb[6].mxu0 }
 0x2e6   :  { %v375_v41 = vpack.c.bf16 %v370_v38, %v370_v38  ;;  %v484_v42 = vpop.f32.mrb[7].mxu0 }
 0x2e8   :  { %376 = vst [vmem:[#allocation10] sm:$0xf] %v375_v41 }
 0x2e9   :  { %613 = shalt.err (!%p610_p8)
}
 0x2ea   :  { %s614_s6 = scalar_lea.hbm %s790_s7, 64 }
 0x2eb   :  { %p615_p9 = scmp.ne.s32.totalorder %s790_s7, %s614_s6  ;;  %p618_p10 = scmp.lt.u32.totalorder %s614_s6, %s790_s7 }
 0x2ed   :  { %p620_p11 = pnand %p618_p10, %p615_p9 }
 0x2ef   :  { %623 = shalt.err (!%p620_p11)
}
 0x2f0   :  { %386 = dma.vmem_to_hbm [thread:$0]  %s384_s29, 64, %s790_s7, [#allocation4]  }
 0x2f1   :  { %630 = dma.done.wait [#allocation4], 64  }
 0x2f2   :  { %631 = vsyncadd [#allocation4], 4294967232 }
 0x2f3   :  { %390 = vsyncpa [#allocation3], 1 }
 0x2f4   :  { %391 = vsyncpa [#allocation6], 1 }
 0x2f5   :  { %392 = vsyncpa [#allocation9], 1 }
 0x2f6   :  { %393 = vsyncpa [#allocation4], 1 }

</bundles_post_ra>
